<compile_context>
chip_gen: v7x
topology: tpu7x:2x2x1
jax: 0.10.0
libtpu: 0.0.40
codegen_flags: <defaults>
</compile_context>

<pallas_src>
import jax
import jax.numpy as jnp
from jax.experimental import pallas as pl
from jax.experimental.pallas import tpu as pltpu


# --------------------------------- kernel ----------------------------------

def cat_fusion_kernel(p_ref, w_ref, shift_ref, out_ref):
    """One batch-block per grid step.

    p_ref     : (Bblk, 9*Cin, H*W)  im2col patches, transposed (K-major rows)
    w_ref     : (Co, 9*Cin)         folded conv weight (BN scale pre-applied)
    shift_ref : (Co, H*W)           per-channel shift, pre-broadcast lane-dense
    out_ref   : (Bblk, Co, H*W)     lane-dense NCHW output
    """
    w = w_ref[...]
    shift = shift_ref[...]
    # Static, small loop over the images in this block (each image is its own
    # MXU matmul anyway; no in-kernel batching/relayout needed).
    for b in range(out_ref.shape[0]):
        acc = jnp.dot(w, p_ref[b], preferred_element_type=jnp.float32)
        out_ref[b] = jnp.maximum(acc + shift, 0.0).astype(out_ref.dtype)


# -------------------------------- wrapper ----------------------------------

def cat_fusion(frame_nchw, event_nchw, w_oihw, bias, gamma, beta, mean, var,
               eps=1e-5):
    """Forward of Cat_Fusion. NCHW in / NCHW out (PyTorch layout)."""
    B, Cf, H, W = frame_nchw.shape
    Ce = event_nchw.shape[1]
    Cin = Cf + Ce
    Co = w_oihw.shape[0]
    K = 9 * Cin
    HW = H * W

    # Channel concat + im2col, hoisted out of the kernel (pure XLA).
    # K index ordering = ci * 9 + (ky * 3 + kx), matching the weight reshape.
    x = jnp.concatenate([frame_nchw, event_nchw], axis=1)          # (B,Cin,H,W)
    xpad = jnp.pad(x, ((0, 0), (0, 0), (1, 1), (1, 1)))            # (B,Cin,H+2,W+2)
    taps = [xpad[:, :, ky:ky + H, kx:kx + W]
            for ky in range(3) for kx in range(3)]                 # 9 x (B,Cin,H,W)
    patches = jnp.stack(taps, axis=2).reshape(B, K, HW)            # (B, 9*Cin, H*W)

    # Fold eval-mode BN + conv bias:  ReLU(W_s @ patches + shift)
    scale = gamma / jnp.sqrt(var + eps)                            # (Co,)
    w_mat = (w_oihw * scale[:, None, None, None]).reshape(Co, K)   # (Co, 9*Cin)
    shift = beta + (bias - mean) * scale                           # (Co,)
    shift_b = jnp.broadcast_to(shift[:, None], (Co, HW))           # (Co, H*W)

    # 2 batch-blocks when B is even: both v7x TensorCores stay loaded; on
    # 1-TC v5e/v6e this is just 2 cheap serial steps.
    n_blk = 2 if (B >= 2 and B % 2 == 0) else 1
    b_blk = B // n_blk

    out = pl.pallas_call(
        cat_fusion_kernel,
        out_shape=jax.ShapeDtypeStruct((B, Co, HW), jnp.float32),
        grid_spec=pltpu.PrefetchScalarGridSpec(
            num_scalar_prefetch=0,
            grid=(n_blk,),
            in_specs=[
                pl.BlockSpec((b_blk, K, HW), lambda i: (i, 0, 0)),
                pl.BlockSpec((Co, K), lambda i: (0, 0)),
                pl.BlockSpec((Co, HW), lambda i: (0, 0)),
            ],
            out_specs=pl.BlockSpec((b_blk, Co, HW), lambda i: (i, 0, 0)),
        ),
        compiler_params=pltpu.CompilerParams(
            dimension_semantics=("parallel",)),
    )(patches, w_mat, shift_b)

    return out.reshape(B, Co, H, W)


# ----------------------------- pure-JAX reference ---------------------------

def cat_fusion_ref(frame_nchw, event_nchw, w_oihw, bias, gamma, beta, mean,
                   var, eps=1e-5):
    x = jnp.concatenate([frame_nchw, event_nchw], axis=1)
    y = jax.lax.conv_general_dilated(
        x, w_oihw, (1, 1), 'SAME',
        dimension_numbers=('NCHW', 'OIHW', 'NCHW'))
    y = y + bias[None, :, None, None]
    y = (y - mean[None, :, None, None]) / jnp.sqrt(
        var[None, :, None, None] + eps) * gamma[None, :, None, None] \
        + beta[None, :, None, None]
    return jnp.maximum(y, 0.0)


# ---------------------------------- main ------------------------------------

if __name__ == "__main__":
    B, Co, H, W = 2, 8, 16, 16        # frame/event each carry Co channels
    Cin = 2 * Co                      # cat_CBR input channels

    key = jax.random.PRNGKey(0)
    kf, ke, kw, kb, kg, kbt, km, kv = jax.random.split(key, 8)

    # PyTorch-style NCHW inputs (kept NCHW end to end)
    frame = jax.random.normal(kf, (B, Co, H, W), jnp.float32)
    event = jax.random.normal(ke, (B, Co, H, W), jnp.float32)

    # Conv3x3(bias=True) + BatchNorm2d (eval mode) parameters, OIHW weight
    w = jax.random.normal(kw, (Co, Cin, 3, 3), jnp.float32) * 0.2
    bias = jax.random.normal(kb, (Co,), jnp.float32) * 0.1
    gamma = 1.0 + 0.1 * jax.random.normal(kg, (Co,), jnp.float32)
    beta = 0.1 * jax.random.normal(kbt, (Co,), jnp.float32)
    mean = 0.1 * jax.random.normal(km, (Co,), jnp.float32)
    var = jax.nn.softplus(jax.random.normal(kv, (Co,), jnp.float32)) + 0.5

    out = jax.block_until_ready(
        cat_fusion(frame, event, w, bias, gamma, beta, mean, var))
    ref = jax.block_until_ready(
        cat_fusion_ref(frame, event, w, bias, gamma, beta, mean, var))

    if not jnp.allclose(out, ref, rtol=1e-3, atol=1e-3):
        raise AssertionError(
            f"mismatch: max abs err = {float(jnp.max(jnp.abs(out - ref)))}")

    print("KERNEL_OK")
</pallas_src>

<mosaic_0001>
module attributes {stable_mosaic.version = 11 : i64} {
  func.func @cat_fusion_kernel(%arg0: i32, %arg1: memref<1x144x256xf32, #tpu.memory_space<vmem>>, %arg2: memref<8x144xf32, #tpu.memory_space<vmem>>, %arg3: memref<8x256xf32, #tpu.memory_space<vmem>>, %arg4: memref<1x8x256xf32, #tpu.memory_space<vmem>>) attributes {dimension_semantics = [#tpu.dimension_semantics<parallel>], iteration_bounds = array<i64: 2>, scalar_prefetch = 0 : i64, scratch_operands = 0 : i64, tpu.core_type = #tpu.core_type<tc>, window_params = [{transform_indices = @transform_0, window_bounds = array<i64: 1, 144, 256>}, {pipeline_mode = #tpu.pipeline_mode<synchronous>, transform_indices = @transform_1, window_bounds = array<i64: 8, 144>}, {pipeline_mode = #tpu.pipeline_mode<synchronous>, transform_indices = @transform_2, window_bounds = array<i64: 8, 256>}, {transform_indices = @transform_3, window_bounds = array<i64: 1, 8, 256>}]} {
    %c0 = arith.constant 0 : index
    %c0_0 = arith.constant 0 : index
    %0 = vector.load %arg2[%c0, %c0_0] : memref<8x144xf32, #tpu.memory_space<vmem>>, vector<8x144xf32>
    %c0_1 = arith.constant 0 : index
    %c0_2 = arith.constant 0 : index
    %1 = vector.load %arg3[%c0_1, %c0_2] : memref<8x256xf32, #tpu.memory_space<vmem>>, vector<8x256xf32>
    %c0_3 = arith.constant 0 : index
    %c0_4 = arith.constant 0 : index
    %c0_5 = arith.constant 0 : index
    %2 = vector.load %arg1[%c0_3, %c0_4, %c0_5] : memref<1x144x256xf32, #tpu.memory_space<vmem>>, vector<1x144x256xf32>
    %3 = vector.shape_cast %2 : vector<1x144x256xf32> to vector<144x256xf32>
    %cst = arith.constant dense<0.000000e+00> : vector<8x256xf32>
    %4 = tpu.matmul %0, %3, %cst {dimension_numbers = #tpu.dot_dimension_numbers<[1], [0], [0], [1], [0, 0, 1, 1], [], []>} : vector<8x144xf32>, vector<144x256xf32>, vector<8x256xf32> -> vector<8x256xf32>
    %5 = arith.addf %4, %1 : vector<8x256xf32>
    %cst_6 = arith.constant 0.000000e+00 : f32
    %6 = vector.broadcast %cst_6 : f32 to vector<8x256xf32>
    %7 = arith.maximumf %5, %6 : vector<8x256xf32>
    %c0_7 = arith.constant 0 : index
    %c0_8 = arith.constant 0 : index
    %c0_9 = arith.constant 0 : index
    %8 = vector.load %arg4[%c0_7, %c0_8, %c0_9] : memref<1x8x256xf32, #tpu.memory_space<vmem>>, vector<1x8x256xf32>
    %9 = vector.shape_cast %8 : vector<1x8x256xf32> to vector<8x256xf32>
    %10 = vector.shape_cast %7 : vector<8x256xf32> to vector<1x8x256xf32>
    tpu.vector_store %arg4[%c0_7, %c0_8, %c0_9], %10 {strides = array<i32>} : memref<1x8x256xf32, #tpu.memory_space<vmem>>, vector<1x8x256xf32>,
    return
  }
  func.func @transform_0(%arg0: i32) -> (i32, i32, i32) {
    %c0_i32 = arith.constant 0 : i32
    %c0_i32_0 = arith.constant 0 : i32
    %c0_i32_1 = arith.constant 0 : i32
    return %arg0, %c0_i32, %c0_i32_0 : i32, i32, i32
  }
  func.func @transform_1(%arg0: i32) -> (i32, i32) {
    %c0_i32 = arith.constant 0 : i32
    %c0_i32_0 = arith.constant 0 : i32
    %c0_i32_1 = arith.constant 0 : i32
    return %c0_i32, %c0_i32_0 : i32, i32
  }
  func.func @transform_2(%arg0: i32) -> (i32, i32) {
    %c0_i32 = arith.constant 0 : i32
    %c0_i32_0 = arith.constant 0 : i32
    %c0_i32_1 = arith.constant 0 : i32
    return %c0_i32, %c0_i32_0 : i32, i32
  }
  func.func @transform_3(%arg0: i32) -> (i32, i32, i32) {
    %c0_i32 = arith.constant 0 : i32
    %c0_i32_0 = arith.constant 0 : i32
    %c0_i32_1 = arith.constant 0 : i32
    return %arg0, %c0_i32, %c0_i32_0 : i32, i32, i32
  }
}

</mosaic_0001>

<bundles_post_ra>
// kernel: tpu_custom_call.1
= control target key start
LH: loop header
LB: loop body
LE: loop exit
PB: predicated region body
PF: predicated region fallthrough
CT: control target
= control target key end

     0   :  { %8 = vsyncpa [#allocation3], 0  ;;  %s1014_s0 = inlined_call_operand.hbm [shape: f32[2,144,256], index: 0, kind: input, shape index: {}]   ;;  %s1015_s1 = inlined_call_operand.hbm [shape: f32[8,144], index: 1, kind: input, shape index: {}]   ;;  %s1016_s2 = inlined_call_operand.hbm [shape: f32[8,256], index: 2, kind: input, shape index: {}]   ;;  %s1017_s3 = inlined_call_operand.hbm [shape: f32[2,8,256], index: 3, kind: output, shape index: {}]  }
   0x1   :  { %10 = vsyncpa [#allocation3 + $0x1], 0 }
   0x2   :  { %11 = vsyncpa [#allocation6], 0 }
   0x3   :  { %12 = vsyncpa [#allocation4], 0 }
   0x4   :  { %14 = vsyncpa [#allocation4 + $0x1], 0  ;;  %s746_s12 = smov 0   ;;  %s748_s13 = smov 0  }
   0x5   :  { %s750_s14 = smov 0   ;;  %s752_s15 = smov 0  }
   0x6 LB: > { %s767_s16 = sadd.s32 4294967295, %s718_s15   ;;  %s437_s17 = sadd.s32 4294967294, %s718_s15   ;;  %s718_s15 = sphi %s752_s15, %s1042_s15   ;;  %s714_s14 = sphi %s750_s14, %s1041_s14   ;;  %s710_s13 = sphi %s748_s13, %s1040_s13   ;;  %s706_s12 = sphi %s746_s12, %s1039_s12  }
   0x7   : > { %s771_s18 = sadd.s32 1, %s718_s15   ;;  %s27_s19 = sadd.s32 1, %s714_s14 }
   0x8   : > { %s24_s20 = ssub.s32 %s718_s15, %s771_s18  ;;  %p34_p0 = scmp.ne.s32.totalorder %s714_s14, %s710_s13 }
   0x9   : > { %p25_p1 = scmp.eq.s32.totalorder %s24_s20, 0  ;;  %p35_p2 = scmp.eq.s32.totalorder %s718_s15, 0 }
   0xa   : > { %p40_p3 = scmp.ne.s32.totalorder %s710_s13, %s706_s12  ;;  %p1018_p4 = scmp.eq.s32.totalorder %s767_s16, 0 }
   0xb   : > { %s783_s21 = scalar_select %p25_p1, %s714_s14, %s27_s19  }
   0xc   : > { %p785_p5 = por %p35_p2, %p34_p0  ;;  %p791_p6 = por %p1018_p4, %p40_p3 }
   0xd   : > { %p106_p7 = scmp.eq.s32.totalorder %s767_s16, 1  ;;  %p112_p8 = scmp.eq.s32.totalorder %s437_s17, 1 }
   0xe   : > { %s1024_s23 = scalar_select %p791_p6, 1, 0 }
   0xf   : > { %p438_p9 = scmp.ge.s32.totalorder %s718_s15, 1  ;;  %p119_p10 = scmp.lt.s32.totalorder %s718_s15, 3 }
  0x10   : > { %p798_p11 = por %p106_p7, %p34_p0  ;;  %p802_p12 = por %p112_p8, %p40_p3 }
  0x11   : > { %p806_p13 = pnand %p438_p9, %p119_p10  ;;  %s720_s27 = smov [#allocation5]  }
  0x12   : > { %s1025_s24 = scalar_select %p798_p11, 1, 0 }
  0x13   : > { %s1026_s25 = scalar_select %p802_p12, 1, 0 }
  0x14   : > { %s1027_s26 = scalar_select %p806_p13, 1, 0 }
  0x15   : > { %p505_p2 = pneg %p806_p13  ;;  %s132_s28 = sshll.u32 %s720_s27, 4  ;;  %s133_s28 = int_to_ptr.vmem [resolvable:$true] %s132_s28 }
  0x16   : > { %p522_p4 = scmp.lt.s32.totalorder %s718_s15, 2  ;;  %p1028_p0 = scmp.eq.s32.totalorder %s767_s16, 0 }
  0x17   : > { %s721_s4 = smov [#allocation7]   ;;  %s562_s8 = scalar_lea.hbm %s1015_s1, 256 }
  0x18   : > { %p816_p7 = pnand %p505_p2, %p1028_p0  ;;  %p822_p3 = pnand %p522_p4, %p785_p5 }
  0x19   : > { %s143_s5 = sshll.u32 %s721_s4, 4  ;;  %p563_p8 = scmp.ne.s32.totalorder %s1015_s1, %s562_s8  ;;  %s826_s5 = int_to_ptr.vmem [resolvable:$true] %s143_s5 }
  0x1a   : > { %s1030_s30 = scalar_select %p822_p3, 1, 0 }
  0x1b   : > { %p564_p9 = pneg %p816_p7  ;;  %p569_p10 = scmp.lt.u32.totalorder %s562_s8, %s1015_s1 }
  0x1d   : > { %p565_p4 = pnand %p564_p9, %p563_p8 }
  0x1f   : > { %p566_p5 = pneg %p565_p4 }
  0x21   : > { %p571_p2 = pnand %p569_p10, %p566_p5 }
  0x23   : > { %574 = shalt.err (!%p571_p2)
}
  0x24   : > { %s575_s19 = scalar_lea.vmem %s133_s28, 256  ;;  %p583_p11 = scmp.lt.s32.totalorder %s133_s28, %s133_s28 }
  0x25   : > { %p576_p0 = scmp.ne.s32.totalorder %s133_s28, %s575_s19  ;;  %p584_p6 = scmp.lt.s32.totalorder %s575_s19, %s575_s19 }
  0x27   : > { %p578_p1 = pnand %p576_p0, %p564_p9  ;;  %p585_p13 = por %p584_p6, %p583_p11 }
  0x29   : > { %p579_p12 = pneg %p578_p1 }
  0x2b   : > { %p586_p3 = pnand %p585_p13, %p579_p12 }
  0x2d   : > { %589 = shalt.err (!%p586_p3)
}
  0x2e   : > { %508 = dma.hbm_to_vmem [thread:$0]  (!%p816_p7), %s1015_s1, 256, %s133_s28, [#allocation6]  }
  0x2f   : > { %s154_s27 = sand.u32 1, %s714_s14   ;;  %s590_s7 = scalar_lea.hbm %s1016_s2, 256 }
  0x30   : > { %p591_p1 = scmp.ne.s32.totalorder %s1016_s2, %s590_s7  ;;  %p597_p12 = scmp.lt.u32.totalorder %s590_s7, %s1016_s2 }
  0x32   : > { %p593_p6 = pnand %p591_p1, %p564_p9 }
  0x34   : > { %p594_p11 = pneg %p593_p6 }
  0x36   : > { %p599_p13 = pnand %p597_p12, %p594_p11 }
  0x38   : > { %602 = shalt.err (!%p599_p13)
}
  0x39   : > { %s603_s28 = scalar_lea.vmem %s826_s5, 256  ;;  %p611_p5 = scmp.lt.s32.totalorder %s826_s5, %s826_s5 }
  0x3a   : > { %p604_p3 = scmp.ne.s32.totalorder %s826_s5, %s603_s28  ;;  %p612_p10 = scmp.lt.s32.totalorder %s603_s28, %s603_s28 }
  0x3c   : > { %p606_p8 = pnand %p604_p3, %p564_p9  ;;  %p613_p2 = por %p612_p10, %p611_p5 }
  0x3e   : > { %p607_p4 = pneg %p606_p8 }
  0x40   : > { %p614_p0 = pnand %p613_p2, %p607_p4 }
  0x42   : > { %617 = shalt.err (!%p614_p0)
}
  0x43   : > { %511 = dma.hbm_to_vmem [thread:$0]  (!%p816_p7), %s1016_s2, 256, %s826_s5, [#allocation6]  }
  0x44   : > { %s490_s20 = smul.u32 288, %s154_s27  ;;  %s884_s9 = scalar_lea.sflag [#allocation3], %s154_s27 }
  0x45   : > { %s491_s22 = smul.u32 4608, %s718_s15  ;;  %p1031_p7 = scmp.ne.s32.totalorder %s1030_s30, 0 }
  0x46   : > { %s158_s29 = scalar_lea.vmem [#allocation2], %s490_s20  ;;  %s623_s28 = scalar_lea.hbm %s1014_s0, 9216 }
  0x47   : > { %s880_s7 = scalar_lea.hbm %s1014_s0, %s491_s22  ;;  %s165_s8 = sshll.u32 %s158_s29, 4  ;;  %s882_s8 = int_to_ptr.vmem [resolvable:$true] %s165_s8 }
  0x48   : > { %s618_s10 = scalar_lea.hbm %s880_s7, 4608  ;;  %p620_p1 = pneg %p1031_p7 }
  0x49   : > { %p619_p9 = scmp.ne.s32.totalorder %s880_s7, %s618_s10  ;;  %p624_p12 = scmp.lt.u32.totalorder %s880_s7, %s1014_s0 }
  0x4a   : > { %p625_p13 = scmp.lt.u32.totalorder %s623_s28, %s618_s10  ;;  %p627_p8 = scmp.lt.u32.totalorder %s618_s10, %s880_s7 }
  0x4b   : > { %p621_p6 = pnand %p620_p1, %p619_p9 }
  0x4c   : > { %p626_p3 = por %p625_p13, %p624_p12 }
  0x4d   : > { %p622_p11 = pneg %p621_p6 }
  0x4e   : > { %p628_p4 = por %p627_p8, %p626_p3 }
  0x50   : > { %p629_p5 = pnand %p628_p4, %p622_p11 }
  0x52   : > { %632 = shalt.err (!%p629_p5)
}
  0x53   : > { %s633_s27 = scalar_lea.vmem %s882_s8, 4608  ;;  %s722_s20 = smov [#allocation2]  }
  0x54   : > { %p634_p10 = scmp.ne.s32.totalorder %s882_s8, %s633_s27  ;;  %s638_s22 = sshll.u32 %s722_s20, 4  ;;  %s639_s22 = int_to_ptr.vmem [resolvable:$false] %s638_s22 }
  0x55   : > { %s640_s4 = scalar_lea.vmem %s639_s22, 9216  ;;  %p641_p9 = scmp.lt.s32.totalorder %s882_s8, %s639_s22 }
  0x56   : > { %p636_p2 = pnand %p634_p10, %p620_p1  ;;  %p642_p6 = scmp.lt.s32.totalorder %s640_s4, %s633_s27 }
  0x58   : > { %p637_p0 = pneg %p636_p2  ;;  %p643_p12 = por %p642_p6, %p641_p9 }
  0x5a   : > { %p644_p13 = pnand %p643_p12, %p637_p0 }
  0x5c   : > { %647 = shalt.err (!%p644_p13)
}
  0x5d   : > { %s723_s6 = smov 256   ;;  %s724_s29 = smov 16  }
  0x5e   : > { %515 = dma.hbm_to_vmem [thread:$0]  (!%p1031_p7), %s880_s7, 4608, %s882_s8, %s884_s9, %s723_s6, %s723_s6, %s724_s29  }
  0x5f   : > { %p1032_p1 = scmp.ne.s32.totalorder %s1027_s26, 0 }
  0x60   : > { %s915_s10 = sand.u32 (!%p1032_p1), 1, %s710_s13   ;;  %p1033_p11 = scmp.ne.s32.totalorder (!%p1032_p1), %s1024_s23, 0 }
  0x61   : > { %177 = sbr.rel (%p1032_p1) target bundleno = 378 (0x17a), region = 32  ;;  %s180_s11 = scalar_lea.sflag (!%p1032_p1), [#allocation3], %s915_s10 }
  0x62   : > { %s492_s5 = smul.u32 (!%p1032_p1), 288, %s915_s10 }
  0x64   : > { %s919_s28 = scalar_lea.vmem (!%p1032_p1), [#allocation2], %s492_s5 }
  0x68   : > { %693 = dma.done.wait (%p1033_p11), %s180_s11, 4608  }
  0x69   : > { %695 = vsyncadd (%p1033_p11), %s180_s11, 4294962688  ;;  %p1034_p7 = scmp.eq.s32.totalorder %s767_s16, 0 }
  0x6b   : > { %697 = dma.done.wait (%p1034_p7), [#allocation6], 512   ;;  %p1035_p3 = pmov %p1034_p7 }
  0x6c   : > { %v219_v0 = vld [vmem:[%s919_s28 + $0x8] sm:$0xff]  ;;  %v221_v1 = vld [vmem:[%s919_s28 + $0x18] sm:$0xff]  ;;  %v218_v2 = vld [vmem:[%s919_s28] sm:$0xff]  ;;  %vm254_vm0 = vcmask 130048   ;;  %s446_s23 = sshll.u32 %s915_s10, 4  ;;  %s453_s26 = sshll.u32 %s767_s16, 8 }
  0x6d   : > { %699 = vsyncadd (%p1035_p3), [#allocation6], 4294966784  ;;  %v454_v3 = vpack.c.bf16 %v221_v1, %v219_v0  ;;  %v220_v4 = vld [vmem:[%s919_s28 + $0x10] sm:$0xff]  ;;  %v223_v5 = vld [vmem:[%s919_s28 + $0x28] sm:$0xff]  ;;  %s213_s30 = scalar_lea.vmem [#allocation8], %s446_s23  ;;  %s970_s17 = scalar_lea.hbm %s1017_s3, %s453_s26 }
  0x6e   : > { %v225_v6 = vld [vmem:[%s919_s28 + $0x38] sm:$0xff]  ;;  %v456_v7 = vpack.c.bf16 %v220_v4, %v218_v2  ;;  %v222_v9 = vld [vmem:[%s919_s28 + $0x20] sm:$0xff]  ;;  %v224_v10 = vld [vmem:[%s919_s28 + $0x30] sm:$0xff]  ;;  %s348_s7 = sshll.u32 %s213_s30, 4  ;;  %s334_s19 = scalar_lea.sflag [#allocation4], %s915_s10  ;;  %s972_s7 = int_to_ptr.vmem [resolvable:$true] %s348_s7 }
  0x6f   : > { %v458_v8 = vpack.c.bf16 %v225_v6, %v223_v5  ;;  %v227_v11 = vld [vmem:[%s919_s28 + $0x48] sm:$0xff]  ;;  %455 = vmatprep.subr.bf16.mxu0 %v454_v3  ;;  %v229_v12 = vld [vmem:[%s919_s28 + $0x58] sm:$0xff]  ;;  %v460_v13 = vpack.c.bf16 %v224_v10, %v222_v9  ;;  %v226_v15 = vld [vmem:[%s919_s28 + $0x40] sm:$0xff]  ;;  %s648_s27 = scalar_lea.vmem %s972_s7, 256  ;;  %p1036_p4 = scmp.ne.s32.totalorder %s1025_s24, 0 }
  0x70   : > { %457 = vmatpush1.bf16.msra.mxu0 %v456_v7  ;;  %v462_v14 = vpack.c.bf16 %v229_v12, %v227_v11  ;;  %v228_v16 = vld [vmem:[%s919_s28 + $0x50] sm:$0xff]  ;;  %v231_v17 = vld [vmem:[%s919_s28 + $0x68] sm:$0xff]  ;;  %v233_v18 = vld [vmem:[%s919_s28 + $0x78] sm:$0xff]  ;;  %p649_p8 = scmp.ne.s32.totalorder %s972_s7, %s648_s27  ;;  %s725_s16 = smov [#allocation8]  }
  0x71   : > { %459 = vmatprep.subr.bf16.mxu0 %v458_v8  ;;  %v464_v19 = vpack.c.bf16 %v228_v16, %v226_v15  ;;  %v466_v20 = vpack.c.bf16 %v233_v18, %v231_v17  ;;  %v230_v21 = vld [vmem:[%s919_s28 + $0x60] sm:$0xff]  ;;  %v232_v22 = vld [vmem:[%s919_s28 + $0x70] sm:$0xff]  ;;  %v235_v23 = vld [vmem:[%s919_s28 + $0x88] sm:$0xff]  ;;  %s652_s20 = sshll.u32 %s725_s16, 4  ;;  %s653_s20 = int_to_ptr.vmem [resolvable:$false] %s652_s20 }
  0x72   : > { %v237_v24 = vld [vmem:[%s919_s28 + $0x98] sm:$0xff]  ;;  %v468_v25 = vpack.c.bf16 %v232_v22, %v230_v21  ;;  %v215_v26 = vld [vmem:[#allocation5 + $0x8] sm:$0xff]  ;;  %v234_v28 = vld [vmem:[%s919_s28 + $0x80] sm:$0xff]  ;;  %p650_p5 = pnand %p649_p8, %p1036_p4  ;;  %s654_s22 = scalar_lea.vmem %s653_s20, 512 }
  0x73   : > { %v470_v27 = vpack.c.bf16 %v237_v24, %v235_v23  ;;  %v236_v29 = vld [vmem:[%s919_s28 + $0x90] sm:$0xff]  ;;  %447 = vmatprep.mubr.msk.f32.mxu0 %vm254_vm0, %v215_v26  ;;  %v239_v30 = vld [vmem:[%s919_s28 + $0xa8] sm:$0xff]  ;;  %v241_v31 = vld [vmem:[%s919_s28 + $0xb8] sm:$0xff]  ;;  %p655_p2 = scmp.lt.s32.totalorder %s972_s7, %s653_s20  ;;  %p656_p0 = scmp.lt.s32.totalorder %s654_s22, %s648_s27 }
  0x74   : > { %461 = vmatpush1.bf16.msra.mxu0 %v460_v13  ;;  %v472_v32 = vpack.c.bf16 %v236_v29, %v234_v28  ;;  %v474_v33 = vpack.c.bf16 %v241_v31, %v239_v30  ;;  %v238_v34 = vld [vmem:[%s919_s28 + $0xa0] sm:$0xff]  ;;  %v240_v35 = vld [vmem:[%s919_s28 + $0xb0] sm:$0xff]  ;;  %v243_v36 = vld [vmem:[%s919_s28 + $0xc8] sm:$0xff]  ;;  %p651_p10 = pneg %p650_p5 }
  0x75   : > { %463 = vmatprep.subr.bf16.mxu0 %v462_v14  ;;  %v245_v37 = vld [vmem:[%s919_s28 + $0xd8] sm:$0xff]  ;;  %v476_v38 = vpack.c.bf16 %v240_v35, %v238_v34  ;;  %v242_v40 = vld [vmem:[%s919_s28 + $0xc0] sm:$0xff]  ;;  %v244_v41 = vld [vmem:[%s919_s28 + $0xd0] sm:$0xff]  ;;  %p657_p9 = por %p656_p0, %p655_p2 }
  0x76   : > { %v478_v39 = vpack.c.bf16 %v245_v37, %v243_v36  ;;  %v247_v42 = vld [vmem:[%s919_s28 + $0xe8] sm:$0xff]  ;;  %v249_v43 = vld [vmem:[%s919_s28 + $0xf8] sm:$0xff]  ;;  %v480_v44 = vpack.c.bf16 %v244_v41, %v242_v40  ;;  %v246_v46 = vld [vmem:[%s919_s28 + $0xe0] sm:$0xff] }
  0x77   : > { %v482_v45 = vpack.c.bf16 %v249_v43, %v247_v42  ;;  %v248_v47 = vld [vmem:[%s919_s28 + $0xf0] sm:$0xff]  ;;  %v251_v48 = vld [vmem:[%s919_s28 + $0x108] sm:$0xff]  ;;  %v253_v49 = vld [vmem:[%s919_s28 + $0x118] sm:$0xff]  ;;  %p658_p6 = pnand %p657_p9, %p651_p10 }
  0x78   : > { %465 = vmatpush1.bf16.msra.mxu0 %v464_v19  ;;  %v484_v50 = vpack.c.bf16 %v248_v47, %v246_v46  ;;  %v486_v51 = vpack.c.bf16 %v253_v49, %v251_v48  ;;  %v250_v52 = vld [vmem:[%s919_s28 + $0x100] sm:$0xff]  ;;  %v252_v53 = vld [vmem:[%s919_s28 + $0x110] sm:$0xff]  ;;  %v217_v57 = vld [vmem:[#allocation7 + $0x8] sm:$0xff] }
  0x79   : > { %467 = vmatprep.subr.bf16.mxu0 %v466_v20  ;;  %v488_v54 = vpack.c.bf16 %v252_v53, %v250_v52  ;;  %v214_v55 = vld [vmem:[#allocation5] sm:$0xff]  ;;  %v216_v56 = vld [vmem:[#allocation7] sm:$0xff] }
  0x7c   : > { %469 = vmatpush1.bf16.msra.mxu0 %v468_v25 }
  0x7d   : > { %471 = vmatprep.subr.bf16.mxu0 %v470_v27 }
  0x80   : > { %473 = vmatpush1.bf16.msra.mxu0 %v472_v32 }
  0x81   : > { %475 = vmatprep.subr.bf16.mxu0 %v474_v33 }
  0x84   : > { %477 = vmatpush1.bf16.msra.mxu0 %v476_v38 }
  0x85   : > { %479 = vmatprep.subr.bf16.mxu0 %v478_v39 }
  0x88   : > { %481 = vmatpush1.bf16.msra.mxu0 %v480_v44 }
  0x89   : > { %483 = vmatprep.subr.bf16.mxu0 %v482_v45 }
  0x8c   : > { %485 = vmatpush1.bf16.msra.mxu0 %v484_v50 }
  0x8d   : > { %487 = vmatprep.subr.bf16.mxu0 %v486_v51 }
  0x90   : > { %489 = vmatpush1.bf16.msra.mxu0 %v488_v54 }
  0x93   : > { %323 = vmatmul.mubr.f32.vlgmr.msra.gmra.mrb[0].mxu0 %v214_v55 }
 0x166   : > { %v324_v58 = vpop.f32.mrb[0].mxu0 }
 0x167   : > { %v325_v59 = vadd.f32 %v324_v58, %v216_v56  ;;  %v326_v60 = vpop.f32.mrb[1].mxu0 }
 0x168   : > { %v327_v61 = vadd.f32 %v326_v60, %v217_v57 }
 0x169   : > { %v329_v62 = vmax.f32 %v325_v59, 0.0 }
 0x16a   : > { %v330_v63 = vmax.f32 %v327_v61, 0.0 }
 0x16b   : > { %331 = vst [vmem:[%s213_s30] sm:$0xff] %v329_v62 }
 0x16c   : > { %332 = vst [vmem:[%s213_s30 + $0x8] sm:$0xff] %v330_v63 }
 0x16d   : > { %661 = shalt.err (!%p658_p6)
}
 0x16e   : > { %s662_s4 = scalar_lea.hbm %s970_s17, 256  ;;  %s666_s10 = scalar_lea.hbm %s1017_s3, 512 }
 0x16f   : > { %p663_p12 = scmp.ne.s32.totalorder %s970_s17, %s662_s4  ;;  %p667_p11 = scmp.lt.u32.totalorder %s970_s17, %s1017_s3 }
 0x170   : > { %p668_p7 = scmp.lt.u32.totalorder %s666_s10, %s662_s4  ;;  %p670_p8 = scmp.lt.u32.totalorder %s662_s4, %s970_s17 }
 0x171   : > { %p664_p13 = pnand %p663_p12, %p1036_p4 }
 0x172   : > { %p669_p3 = por %p668_p7, %p667_p11 }
 0x173   : > { %p665_p1 = pneg %p664_p13 }
 0x174   : > { %p671_p5 = por %p670_p8, %p669_p3 }
 0x176   : > { %p672_p10 = pnand %p671_p5, %p665_p1 }
 0x178   : > { %675 = shalt.err (!%p672_p10)
}
 0x179   : > { %503 = dma.vmem_to_hbm [thread:$0]  (%p1036_p4), %s972_s7, 256, %s970_s17, %s334_s19  }
 0x17a PF: > { %s360_s28 = sand.u32 1, %s706_s12   ;;  %p1037_p2 = scmp.ne.s32.totalorder %s1026_s25, 0 }
 0x17b   : > { %p1038_p0 = scmp.ge.s32.totalorder %s718_s15, 2  ;;  %s361_s23 = scalar_lea.sflag [#allocation4], %s360_s28 }
 0x17d   : > { %p517_p9 = pnand %p1038_p0, %p1037_p2 }
 0x17f   : > { %701 = dma.done.wait (!%p517_p9), %s361_s23, 256  }
 0x180   : > { %703 = vsyncadd (!%p517_p9), %s361_s23, 4294967040  ;;  %p17_p6 = scmp.ge.s32.totalorder %s771_s18, 4   ;;  %s1039_s12 = smov %s710_s13 }
 0x181   : > { %s1040_s13 = smov %s714_s14  ;;  %s1041_s14 = smov %s783_s21 }
 0x182   : > { %s1042_s15 = smov %s771_s18  ;;  %19 = sbr.rel (!%p17_p6) target bundleno = 6 (0x6), region = 85 }
 0x189   :  { %366 = vsyncpa [#allocation3], 1 }
 0x18a   :  { %368 = vsyncpa [#allocation3 + $0x1], 1 }
 0x18b   :  { %369 = vsyncpa [#allocation6], 1 }
 0x18c   :  { %370 = vsyncpa [#allocation4], 1 }
 0x18d   :  { %372 = vsyncpa [#allocation4 + $0x1], 1 }

</bundles_post_ra>
